<compile_context>
chip_gen: v6e
topology: v6e:2x2x1
jax: 0.10.0
libtpu: 0.0.40
codegen_flags: <defaults>
</compile_context>

<pallas_src>
import functools

import jax
import jax.numpy as jnp
from jax.experimental import pallas as pl
from jax.experimental.pallas import tpu as pltpu


def _clamp_kernel(x_ref, o_ref, *, lo, hi):
    # Elementwise clamp on the whole VMEM tile (2 VPU ops per vreg; HBM-bound).
    x = x_ref[...]
    o_ref[...] = jnp.minimum(jnp.maximum(x, jnp.asarray(lo, x.dtype)),
                             jnp.asarray(hi, x.dtype))


@functools.lru_cache(maxsize=None)
def _chip_tile_config():
    """Return (target_tile_bytes, vmem_limit_bytes) for the local TPU generation."""
    kind = ""
    try:
        kind = jax.devices()[0].device_kind.lower()
    except Exception:
        pass
    if "v7" in kind or "7x" in kind:
        # 64 MiB physical VMEM, ~3.2 TB/s HBM: big tiles; raise scoped limit so
        # 2 buffers x (in + out) x 8 MiB = 32 MiB fits with headroom.
        return 8 << 20, 48 << 20
    if "v6" in kind:
        # 128 MiB physical, 32 MiB default scoped: 4 MiB tiles -> 16 MiB buffers.
        return 4 << 20, 32 << 20
    # v5e / v5p / unknown: conservative. 3 MiB tiles -> 12 MiB double-buffered
    # in+out, under v5e's 16 MiB default scoped VMEM; leave the limit alone.
    return 3 << 20, None


def _clamp_bounds(dtype):
    if jnp.issubdtype(dtype, jnp.integer):
        info = jnp.iinfo(dtype)
        return int(max(-1000, int(info.min))), int(min(1000, int(info.max)))
    return -1000.0, 1000.0


def dur_activation(x, *, target_tile_bytes=None, donate_input=False):
    """torch.clamp(x, -1000, 1000) via a Pallas TPU kernel. Works for any shape."""
    orig_shape = x.shape
    dtype = x.dtype
    n = x.size
    if n == 0:
        return x

    lo, hi = _clamp_bounds(dtype)

    if n % 128 != 0:
        # Ragged fallback: a padded Pallas pass would add pad + slice HBM round
        # trips; a plain clip is strictly cheaper and XLA can fuse it.
        # TODO(synk): only hit for unusual non-128-divisible activation sizes.
        return jnp.clip(x, lo, hi)

    chip_tile_bytes, vmem_limit = _chip_tile_config()
    if target_tile_bytes is None:
        target_tile_bytes = chip_tile_bytes

    itemsize = jnp.dtype(dtype).itemsize
    # Dtype-aware sublane multiple: 8 rows (f32), 16 (bf16/f16), 32 (int8/fp8).
    sub = max(8, 32 // itemsize)

    # Widest lane-dense column count (multiple of 128) dividing n; metadata-only
    # reshape, no HBM copy.
    cols = 128
    for c in (2048, 1024, 512, 256, 128):
        if n % c == 0:
            cols = c
            break
    rows = n // cols
    x2d = x.reshape(rows, cols)

    # Row-tile size: ~target_tile_bytes per block, sublane-aligned.
    tile_rows = max(1, target_tile_bytes // (cols * itemsize))
    tr = max(sub, (tile_rows // sub) * sub)
    if tr >= rows:
        tr = rows  # block equal to full extent is always legal

    # Guarantee >=2 (ideally 4) blocks for large arrays: enables dual-TC
    # sharding on v7x and DMA/compute overlap; cheap elsewhere.
    total_bytes = n * itemsize
    nb = -(-rows // tr)
    if nb < 4 and total_bytes >= (2 << 20) and rows >= 4 * sub:
        tr = max(sub, ((rows // 4) // sub) * sub)
    elif nb < 2 and total_bytes >= (1 << 20) and rows >= 2 * sub:
        tr = max(sub, ((rows // 2) // sub) * sub)
    num_blocks = -(-rows // tr)  # tail block (if any) is masked by Pallas

    kernel = functools.partial(_clamp_kernel, lo=lo, hi=hi)
    out2d = pl.pallas_call(
        kernel,
        out_shape=jax.ShapeDtypeStruct((rows, cols), dtype),
        grid=(num_blocks,),
        in_specs=[pl.BlockSpec((tr, cols), lambda i: (i, 0))],
        out_specs=pl.BlockSpec((tr, cols), lambda i: (i, 0)),
        compiler_params=pltpu.CompilerParams(
            dimension_semantics=("parallel",),
            vmem_limit_bytes=vmem_limit,
        ),
        # Reuse the (donated) input buffer for the output when the caller allows.
        input_output_aliases=({0: 0} if donate_input else {}),
    )(x2d)

    return out2d.reshape(orig_shape)


if __name__ == "__main__":
    key = jax.random.PRNGKey(0)

    # 1) Small NCHW-style input consistent with the module's generic forward.
    x = jax.random.normal(key, (2, 4, 16, 16), dtype=jnp.float32) * 2000.0
    out = jax.block_until_ready(dur_activation(x))
    ref = jnp.clip(x, -1000.0, 1000.0)
    assert out.shape == x.shape and out.dtype == x.dtype
    assert jnp.allclose(out, ref), "mismatch (f32 fast path)"

    # 2) bf16 exercises the dtype-aware (16-row) sublane alignment.
    xb = (jax.random.normal(jax.random.PRNGKey(1), (64, 512)) * 3000.0).astype(jnp.bfloat16)
    outb = jax.block_until_ready(dur_activation(xb))
    assert outb.dtype == jnp.bfloat16
    assert jnp.allclose(outb.astype(jnp.float32),
                        jnp.clip(xb, -1000.0, 1000.0).astype(jnp.float32)), "mismatch (bf16)"

    # 3) Integer input: dtype-matched bounds (no float32 round trip).
    xi = jax.random.randint(jax.random.PRNGKey(2), (4, 8, 32), -5000, 5000, dtype=jnp.int32)
    outi = jax.block_until_ready(dur_activation(xi))
    assert outi.dtype == jnp.int32
    assert jnp.array_equal(outi, jnp.clip(xi, -1000, 1000)), "mismatch (int32)"

    # 4) Multi-block path (forced >=4 blocks) + donated-input aliasing.
    xl = jax.random.normal(jax.random.PRNGKey(3), (1024, 2048), dtype=jnp.float32) * 2500.0
    refl = jnp.clip(xl, -1000.0, 1000.0)
    refl.block_until_ready()
    clamp_donating = jax.jit(functools.partial(dur_activation, donate_input=True),
                             donate_argnums=(0,))
    outl = jax.block_until_ready(clamp_donating(xl))  # xl is consumed (donated)
    assert jnp.allclose(outl, refl), "mismatch (multi-block / aliased path)"

    # 5) Ragged size exercises the fused-clip fallback (no pad/slice HBM passes).
    x2 = jax.random.normal(jax.random.PRNGKey(4), (3, 5, 7), dtype=jnp.float32) * 3000.0
    out2 = jax.block_until_ready(dur_activation(x2))
    assert out2.shape == x2.shape and out2.dtype == x2.dtype
    assert jnp.allclose(out2, jnp.clip(x2, -1000.0, 1000.0)), "mismatch (ragged path)"

    print("KERNEL_OK")
</pallas_src>

<mosaic_0001>
module attributes {stable_mosaic.version = 11 : i64} {
  func.func @_clamp_kernel(%arg0: i32, %arg1: memref<1x2048xf32, #tpu.memory_space<vmem>>, %arg2: memref<1x2048xf32, #tpu.memory_space<vmem>>) attributes {dimension_semantics = [#tpu.dimension_semantics<parallel>], iteration_bounds = array<i64: 1>, scalar_prefetch = 0 : i64, scratch_operands = 0 : i64, tpu.core_type = #tpu.core_type<tc>, window_params = [{transform_indices = @transform_0, window_bounds = array<i64: 1, 2048>}, {transform_indices = @transform_1, window_bounds = array<i64: 1, 2048>}]} {
    %c0 = arith.constant 0 : index
    %c0_0 = arith.constant 0 : index
    %0 = vector.load %arg1[%c0, %c0_0] : memref<1x2048xf32, #tpu.memory_space<vmem>>, vector<1x2048xf32>
    %cst = arith.constant -1.000000e+03 : f32
    %1 = vector.broadcast %cst : f32 to vector<1x2048xf32>
    %2 = arith.maximumf %0, %1 : vector<1x2048xf32>
    %cst_1 = arith.constant 1.000000e+03 : f32
    %3 = vector.broadcast %cst_1 : f32 to vector<1x2048xf32>
    %4 = arith.minimumf %2, %3 : vector<1x2048xf32>
    %c0_2 = arith.constant 0 : index
    %c0_3 = arith.constant 0 : index
    %5 = vector.load %arg2[%c0_2, %c0_3] : memref<1x2048xf32, #tpu.memory_space<vmem>>, vector<1x2048xf32>
    tpu.vector_store %arg2[%c0_2, %c0_3], %4 {strides = array<i32>} : memref<1x2048xf32, #tpu.memory_space<vmem>>, vector<1x2048xf32>,
    return
  }
  func.func @transform_0(%arg0: i32) -> (i32, i32) {
    %c0_i32 = arith.constant 0 : i32
    %c0_i32_0 = arith.constant 0 : i32
    return %arg0, %c0_i32 : i32, i32
  }
  func.func @transform_1(%arg0: i32) -> (i32, i32) {
    %c0_i32 = arith.constant 0 : i32
    %c0_i32_0 = arith.constant 0 : i32
    return %arg0, %c0_i32 : i32, i32
  }
}

</mosaic_0001>

<bundles_post_ra>
// kernel: tpu_custom_call.1
= control target key start
LH: loop header
LB: loop body
LE: loop exit
PB: predicated region body
PF: predicated region fallthrough
CT: control target
= control target key end

     0   :  { %6 = vsyncpa [#allocation3], 0  ;;  %s110_s0 = inlined_call_operand.hbm [shape: f32[1,2048], index: 0, kind: input, shape index: {}]   ;;  %s111_s1 = inlined_call_operand.hbm [shape: f32[1,2048], index: 1, kind: output, shape index: {}]  }
   0x1   :  { %7 = vsyncpa [#allocation4], 0  ;;  %s92_s6 = smov [#allocation2]  }
   0x2   :  { %s14_s7 = sshll.u32 %s92_s6, 4  ;;  %s15_s7 = int_to_ptr.vmem [resolvable:$true] %s14_s7 }
   0x3   :  { %s56_s8 = scalar_lea.vmem %s15_s7, 256  ;;  %p61_p1 = scmp.lt.s32.totalorder %s15_s7, %s15_s7 }
   0x4   :  { %p57_p0 = scmp.ne.s32.totalorder %s15_s7, %s56_s8  ;;  %p62_p2 = scmp.lt.s32.totalorder %s56_s8, %s56_s8 }
   0x6   :  { %p63_p3 = por %p62_p2, %p61_p1 }
   0x8   :  { %p64_p4 = pnand %p63_p3, %p57_p0 }
   0xa   :  { %67 = shalt.err (!%p64_p4)
}
   0xb   :  { %17 = dma.hbm_to_vmem [thread:$0]  %s110_s0, 256, %s15_s7, [#allocation3]  }
   0xc   :  { %88 = dma.done.wait [#allocation3], 256  }
   0xd   :  { %89 = vsyncadd [#allocation3], 4294967040  ;;  %s93_s11 = smov [#allocation5]   ;;  %v21_v0 = vld [vmem:[#allocation2] sm:$0xff]  ;;  %v22_v1 = vld [vmem:[#allocation2 + $0x8] sm:$0xff] }
   0xe   :  { %s35_s12 = sshll.u32 %s93_s11, 4  ;;  %v44_v2 = vclamps-f32 %v21_v0, 1000.0  ;;  %v45_v3 = vclamps-f32 %v22_v1, 1000.0  ;;  %s36_s12 = int_to_ptr.vmem [resolvable:$true] %s35_s12 }
   0xf   :  { %s68_s13 = scalar_lea.vmem %s36_s12, 256  ;;  %p73_p6 = scmp.lt.s32.totalorder %s36_s12, %s36_s12 }
  0x10   :  { %27 = vst [vmem:[#allocation5] sm:$0xff] %v44_v2  ;;  %28 = vst [vmem:[#allocation5 + $0x8] sm:$0xff] %v45_v3  ;;  %p69_p5 = scmp.ne.s32.totalorder %s36_s12, %s68_s13  ;;  %p74_p7 = scmp.lt.s32.totalorder %s68_s13, %s68_s13 }
  0x12   :  { %p75_p8 = por %p74_p7, %p73_p6 }
  0x14   :  { %p76_p9 = pnand %p75_p8, %p69_p5 }
  0x16   :  { %79 = shalt.err (!%p76_p9)
}
  0x17   :  { %38 = dma.vmem_to_hbm [thread:$0]  %s36_s12, 256, %s111_s1, [#allocation4]  }
  0x18   :  { %90 = dma.done.wait [#allocation4], 256  }
  0x19   :  { %91 = vsyncadd [#allocation4], 4294967040 }
  0x1a   :  { %42 = vsyncpa [#allocation3], 1 }
  0x1b   :  { %43 = vsyncpa [#allocation4], 1 }

</bundles_post_ra>
